<compile_context>
chip_gen: v7x
topology: tpu7x:2x2x1
jax: 0.10.0
libtpu: 0.0.40
codegen_flags: <defaults>
</compile_context>

<pallas_src>
import math

import jax
import jax.numpy as jnp
from jax.experimental import pallas as pl
from jax.experimental.pallas import tpu as pltpu


def _round_up(x, m):
    return (x + m - 1) // m * m


def _resident_spec(block_shape, index_map):
    """Constant-index (resident) block: request single-buffering to halve its
    VMEM footprint; fall back to the default if this JAX build rejects it."""
    try:
        return pl.BlockSpec(block_shape, index_map,
                            pipeline_mode=pl.Buffered(1))
    except Exception:  # pragma: no cover - older jax without pipeline_mode
        return pl.BlockSpec(block_shape, index_map)


# ---------------------------------------------------------------------------
# Kernel 1: hoisted input projection  (T*B, D) @ (D, 4*Hp) + b  -> (T*B, 4*Hp)
# One large, MXU-efficient matmul outside the serial recurrence (bf16 operands,
# f32 accumulation).
# ---------------------------------------------------------------------------
def _input_proj_kernel(x_ref, w_ref, b_ref, o_ref):
    o_ref[...] = (
        jnp.dot(x_ref[...], w_ref[...], preferred_element_type=jnp.float32)
        + b_ref[...]
    ).astype(o_ref.dtype)


def _pick_row_tile(tb):
    # Largest power-of-two row tile (multiple of 8 sublanes) dividing tb that
    # still leaves >= 2 grid steps, so dimension_semantics=('parallel',) can
    # shard across the 2 TensorCores on v7x.  Fall back to the whole array.
    for cand in (512, 256, 128, 64, 32, 16, 8):
        if tb % cand == 0 and tb // cand >= 2:
            return cand
    return tb


def _input_projection(x2d_bf16, w_ih_p, b_p):
    TB, D = x2d_bf16.shape
    H4 = w_ih_p.shape[1]
    tm = _pick_row_tile(TB)
    need = (2 * tm * D * 2          # x blocks (bf16, double-buffered)
            + D * H4 * 2            # W_ih (bf16, resident)
            + H4 * 4                # bias (f32, resident)
            + 2 * tm * H4 * 4)      # out blocks (f32, double-buffered)
    return pl.pallas_call(
        _input_proj_kernel,
        out_shape=jax.ShapeDtypeStruct((TB, H4), jnp.float32),
        grid_spec=pltpu.PrefetchScalarGridSpec(
            num_scalar_prefetch=0,
            grid=(TB // tm,),
            in_specs=[
                pl.BlockSpec((tm, D), lambda i: (i, 0)),          # x rows
                _resident_spec((D, H4), lambda i: (0, 0)),        # W_ih
                _resident_spec((1, H4), lambda i: (0, 0)),        # bias
            ],
            out_specs=pl.BlockSpec((tm, H4), lambda i: (i, 0)),
        ),
        compiler_params=pltpu.CompilerParams(
            dimension_semantics=("parallel",),
            vmem_limit_bytes=int(max(2 * need, 32 * 1024 * 1024))),
    )(x2d_bf16, w_ih_p, b_p)


# ---------------------------------------------------------------------------
# Kernel 2: sequential LSTM recurrence over chunks of Tc timesteps.
# ---------------------------------------------------------------------------
def _lstm_recurrence_kernel(gx_ref, w_hh_ref, out_ref, h_scr, c_scr):
    """One grid step == one chunk of Tc timesteps.

    gx_ref  : (Tc*B, 4*Hp) f32   precomputed x @ W_ih + b for this chunk
    w_hh_ref: (Hp, 4*Hp)   bf16  hidden-to-hidden weights (resident in VMEM)
    out_ref : (Tc*B, Hp)   f32   hidden outputs for this chunk (lane-dense)
    h_scr, c_scr : (B, Hp) f32   recurrent state, persists across grid steps
    """
    # init_hidden(): zero h0 / c0 on the first chunk
    @pl.when(pl.program_id(0) == 0)
    def _():
        h_scr[...] = jnp.zeros_like(h_scr)
        c_scr[...] = jnp.zeros_like(c_scr)

    b, hp = h_scr.shape
    tc = gx_ref.shape[0] // b
    w_hh = w_hh_ref[...]               # bf16, resident (loaded once per chunk)
    h = h_scr[...]
    c = c_scr[...]

    # Static (compile-time unrolled) time loop: one MXU push (h @ W_hh, bf16
    # operands, f32 accumulation) per step; gate nonlinearities on the EUP,
    # state update on the VPU.  Gate slices are whole 128-lane blocks.
    for t in range(tc):
        gx_t = gx_ref[pl.ds(t * b, b), :]
        gates = gx_t + jnp.dot(h.astype(jnp.bfloat16), w_hh,
                               preferred_element_type=jnp.float32)
        # sigmoid(x) = 0.5*(1 + tanh(0.5*x)) -> 1 EUP op per gate (i,f share one).
        if_g = 0.5 + 0.5 * jnp.tanh(0.5 * gates[:, : 2 * hp])
        i_g = if_g[:, :hp]
        f_g = if_g[:, hp:]
        g_g = jnp.tanh(gates[:, 2 * hp: 3 * hp])
        o_g = 0.5 + 0.5 * jnp.tanh(0.5 * gates[:, 3 * hp:])
        c = f_g * c + i_g * g_g
        h = o_g * jnp.tanh(c)
        out_ref[pl.ds(t * b, b), :] = h.astype(out_ref.dtype)

    h_scr[...] = h
    c_scr[...] = c


# ---------------------------------------------------------------------------
# Wrapper
# ---------------------------------------------------------------------------
def prepare_lstm_params(w_ih, w_hh, b):
    """Pad each PyTorch-order [i,f,g,o] gate block to a 128-lane boundary and
    cast MXU operands to bf16.  Call ONCE at parameter-load time (not per
    forward call).

    w_ih : (D_in, 4H)  input-to-hidden (pre-transposed)
    w_hh : (H, 4H)     hidden-to-hidden (pre-transposed)
    b    : (1, 4H)     combined bias (b_ih + b_hh), kept f32
    """
    D, H4 = w_ih.shape
    H = H4 // 4
    Hp = _round_up(max(H, 128), 128)

    def pad_gates(w):                          # (..., 4H) -> (..., 4Hp)
        lead = w.shape[:-1]
        w4 = jnp.reshape(w, lead + (4, H))
        w4 = jnp.pad(w4, [(0, 0)] * len(lead) + [(0, 0), (0, Hp - H)])
        return jnp.reshape(w4, lead + (4 * Hp,))

    # Zero padding keeps padded h/c columns exactly zero (padded W_hh rows are
    # zero), so real H columns match the unpadded math.
    w_ih_p = pad_gates(w_ih).astype(jnp.bfloat16)                     # (D, 4Hp)
    w_hh_p = jnp.pad(pad_gates(w_hh),
                     ((0, Hp - H), (0, 0))).astype(jnp.bfloat16)      # (Hp, 4Hp)
    b_p = pad_gates(jnp.reshape(b, (1, H4))).astype(jnp.float32)      # (1, 4Hp)
    return w_ih_p, w_hh_p, b_p, H, Hp


def _pick_time_chunk(t, b, max_chunk=32):
    # Rows per chunk (Tc*B) must be a multiple of 8 sublanes.
    step = math.lcm(8, b) // b
    tc = min(_round_up(max_chunk, step), _round_up(t, step))
    return max(tc, step)


def lstm_forward(x, params, *, chunk_t=None):
    """Single-layer unidirectional LSTM forward with h0 = c0 = 0 (init_hidden).

    x      : (T, B, D_in) time-major input
    params : output of prepare_lstm_params
    returns (T, B, H) float32 full output sequence (RNN.forward return value)
    """
    w_ih_p, w_hh_p, b_p, H, Hp = params
    T, B, D = x.shape

    Tc = chunk_t if chunk_t is not None else _pick_time_chunk(T, B)
    Tp = _round_up(T, Tc)
    if Tp != T:
        # Pad the time axis; the tail chunk's outputs are discarded below.
        x = jnp.pad(x, ((0, Tp - T), (0, 0), (0, 0)))

    # (1) Hoisted input projection: one big MXU matmul over all Tp*B rows.
    gx = _input_projection(
        x.reshape(Tp * B, D).astype(jnp.bfloat16), w_ih_p, b_p)  # (Tp*B, 4Hp) f32

    # (2) Sequential recurrence, chunked over time; (time, batch) flattened to
    #     a sublane-dense row axis so DMA blocks / writebacks are dense.
    rows = Tc * B
    need = (2 * rows * 4 * Hp * 4      # gx blocks (f32, double-buffered)
            + Hp * 4 * Hp * 2          # W_hh (bf16, resident)
            + 2 * rows * Hp * 4        # out blocks (f32, double-buffered)
            + 2 * B * Hp * 4)          # h/c scratch
    out_p = pl.pallas_call(
        _lstm_recurrence_kernel,
        out_shape=jax.ShapeDtypeStruct((Tp * B, Hp), jnp.float32),
        grid_spec=pltpu.PrefetchScalarGridSpec(
            num_scalar_prefetch=0,
            grid=(Tp // Tc,),
            in_specs=[
                pl.BlockSpec((rows, 4 * Hp), lambda i: (i, 0)),   # gx chunk
                _resident_spec((Hp, 4 * Hp), lambda i: (0, 0)),   # W_hh
            ],
            out_specs=pl.BlockSpec((rows, Hp), lambda i: (i, 0)),
            scratch_shapes=[
                pltpu.VMEM((B, Hp), jnp.float32),   # h state
                pltpu.VMEM((B, Hp), jnp.float32),   # c state
            ],
        ),
        # time axis carries the recurrence -> must stay sequential
        compiler_params=pltpu.CompilerParams(
            dimension_semantics=("arbitrary",),
            vmem_limit_bytes=int(max(2 * need, 32 * 1024 * 1024))),
    )(gx, w_hh_p)

    # Strip time padding and per-gate lane padding; pin output dtype to f32.
    out = out_p.reshape(Tp, B, Hp)[:T, :, :H]
    return out.astype(jnp.float32)


# ---------------------------------------------------------------------------
# Pure-JAX reference (lax.scan) with identical semantics (unpadded f32 weights).
# ---------------------------------------------------------------------------
def lstm_ref(x, w_ih, w_hh, b):
    H = w_hh.shape[0]

    def step(carry, x_t):
        h, c = carry
        gates = x_t @ w_ih + h @ w_hh + b
        i = jax.nn.sigmoid(gates[:, 0:H])
        f = jax.nn.sigmoid(gates[:, H:2 * H])
        g = jnp.tanh(gates[:, 2 * H:3 * H])
        o = jax.nn.sigmoid(gates[:, 3 * H:4 * H])
        c = f * c + i * g
        h = o * jnp.tanh(c)
        return (h, c), h

    B = x.shape[1]
    h0 = jnp.zeros((B, H), jnp.float32)
    c0 = jnp.zeros((B, H), jnp.float32)
    _, out = jax.lax.scan(step, (h0, c0), x)
    return out


if __name__ == "__main__":
    # Small shapes consistent with the module: seq=8, batch=2, input=16, hidden=32
    T, B, D_IN, H = 8, 2, 16, 32

    key = jax.random.PRNGKey(0)
    kx, kih, khh, kb = jax.random.split(key, 4)

    x = jax.random.normal(kx, (T, B, D_IN), dtype=jnp.float32)

    # Deterministic parameter init (stand-in for orthogonal_init on the LSTM
    # weights; synthetic, not a checkpoint load).  PyTorch stores weight_ih as
    # (4H, D_in) / weight_hh as (4H, H); we keep the transposed layouts
    # (D_in, 4H) / (H, 4H) for MXU right-multiplication.
    w_ih = jax.random.normal(kih, (D_IN, 4 * H), dtype=jnp.float32) * 0.1
    w_hh = jax.random.normal(khh, (H, 4 * H), dtype=jnp.float32) * 0.1
    b = jax.random.normal(kb, (1, 4 * H), dtype=jnp.float32) * 0.05

    params = prepare_lstm_params(w_ih, w_hh, b)   # padded + bf16, done once

    out = lstm_forward(x, params)
    out = jax.block_until_ready(out)

    ref = lstm_ref(x, w_ih, w_hh, b)
    assert out.shape == (T, B, H), out.shape
    # bf16 MXU operands (f32 accumulation / f32 state) vs f32 reference:
    # tolerance loosened accordingly.
    assert jnp.allclose(out, ref, atol=1e-2, rtol=1e-2), \
        float(jnp.max(jnp.abs(out - ref)))

    print("KERNEL_OK")
</pallas_src>

<mosaic_0001>
module attributes {stable_mosaic.version = 11 : i64} {
  func.func @_input_proj_kernel(%arg0: i32, %arg1: memref<8x16xbf16, #tpu.memory_space<vmem>>, %arg2: memref<16x512xbf16, #tpu.memory_space<vmem>>, %arg3: memref<1x512xf32, #tpu.memory_space<vmem>>, %arg4: memref<8x512xf32, #tpu.memory_space<vmem>>) attributes {dimension_semantics = [#tpu.dimension_semantics<parallel>], iteration_bounds = array<i64: 2>, scalar_prefetch = 0 : i64, scratch_operands = 0 : i64, tpu.core_type = #tpu.core_type<tc>, window_params = [{transform_indices = @transform_0, window_bounds = array<i64: 8, 16>}, {pipeline_mode = #tpu.pipeline_mode<synchronous>, transform_indices = @transform_1, window_bounds = array<i64: 16, 512>}, {pipeline_mode = #tpu.pipeline_mode<synchronous>, transform_indices = @transform_2, window_bounds = array<i64: 1, 512>}, {transform_indices = @transform_3, window_bounds = array<i64: 8, 512>}]} {
    %c0 = arith.constant 0 : index
    %c0_0 = arith.constant 0 : index
    %0 = vector.load %arg1[%c0, %c0_0] : memref<8x16xbf16, #tpu.memory_space<vmem>>, vector<8x16xbf16>
    %c0_1 = arith.constant 0 : index
    %c0_2 = arith.constant 0 : index
    %1 = vector.load %arg2[%c0_1, %c0_2] : memref<16x512xbf16, #tpu.memory_space<vmem>>, vector<16x512xbf16>
    %cst = arith.constant dense<0.000000e+00> : vector<8x512xf32>
    %2 = tpu.matmul %0, %1, %cst {dimension_numbers = #tpu.dot_dimension_numbers<[1], [0], [0], [1], [0, 0, 1, 1], [], []>} : vector<8x16xbf16>, vector<16x512xbf16>, vector<8x512xf32> -> vector<8x512xf32>
    %c0_3 = arith.constant 0 : index
    %c0_4 = arith.constant 0 : index
    %3 = vector.load %arg3[%c0_3, %c0_4] : memref<1x512xf32, #tpu.memory_space<vmem>>, vector<1x512xf32>
    %4 = vector.broadcast %3 : vector<1x512xf32> to vector<8x512xf32>
    %5 = arith.addf %2, %4 : vector<8x512xf32>
    %c0_5 = arith.constant 0 : index
    %c0_6 = arith.constant 0 : index
    %6 = vector.load %arg4[%c0_5, %c0_6] : memref<8x512xf32, #tpu.memory_space<vmem>>, vector<8x512xf32>
    tpu.vector_store %arg4[%c0_5, %c0_6], %5 {strides = array<i32>} : memref<8x512xf32, #tpu.memory_space<vmem>>, vector<8x512xf32>,
    return
  }
  func.func @transform_0(%arg0: i32) -> (i32, i32) {
    %c0_i32 = arith.constant 0 : i32
    %c0_i32_0 = arith.constant 0 : i32
    return %arg0, %c0_i32 : i32, i32
  }
  func.func @transform_1(%arg0: i32) -> (i32, i32) {
    %c0_i32 = arith.constant 0 : i32
    %c0_i32_0 = arith.constant 0 : i32
    %c0_i32_1 = arith.constant 0 : i32
    return %c0_i32, %c0_i32_0 : i32, i32
  }
  func.func @transform_2(%arg0: i32) -> (i32, i32) {
    %c0_i32 = arith.constant 0 : i32
    %c0_i32_0 = arith.constant 0 : i32
    %c0_i32_1 = arith.constant 0 : i32
    return %c0_i32, %c0_i32_0 : i32, i32
  }
  func.func @transform_3(%arg0: i32) -> (i32, i32) {
    %c0_i32 = arith.constant 0 : i32
    %c0_i32_0 = arith.constant 0 : i32
    return %arg0, %c0_i32 : i32, i32
  }
}

</mosaic_0001>

<bundles_post_ra>
// kernel: tpu_custom_call.1
= control target key start
LH: loop header
LB: loop body
LE: loop exit
PB: predicated region body
PF: predicated region fallthrough
CT: control target
= control target key end

     0   :  { %8 = vsyncpa [#allocation3], 0  ;;  %s878_s0 = inlined_call_operand.hbm [shape: bf16[16,16], index: 0, kind: input, shape index: {}]   ;;  %s879_s1 = inlined_call_operand.hbm [shape: bf16[16,512], index: 1, kind: input, shape index: {}]   ;;  %s880_s2 = inlined_call_operand.vmem [shape: f32[1,512], index: 2, kind: input, shape index: {}]   ;;  %s881_s3 = inlined_call_operand.hbm [shape: f32[16,512], index: 3, kind: output, shape index: {}]  }
   0x1   :  { %10 = vsyncpa [#allocation3 + $0x1], 0 }
   0x2   :  { %11 = vsyncpa [#allocation6], 0 }
   0x3   :  { %12 = vsyncpa [#allocation4], 0 }
   0x4   :  { %14 = vsyncpa [#allocation4 + $0x1], 0  ;;  %s678_s12 = smov 0   ;;  %s680_s13 = smov 0  }
   0x5   :  { %s682_s14 = smov 0   ;;  %s684_s15 = smov 0  }
   0x6 LB: > { %s699_s16 = sadd.s32 4294967295, %s650_s15   ;;  %s434_s17 = sadd.s32 4294967294, %s650_s15   ;;  %s650_s15 = sphi %s684_s15, %s901_s15   ;;  %s646_s14 = sphi %s682_s14, %s900_s14   ;;  %s642_s13 = sphi %s680_s13, %s899_s13   ;;  %s638_s12 = sphi %s678_s12, %s898_s12  }
   0x7   : > { %p40_p0 = scmp.ne.s32.totalorder %s642_s13, %s638_s12  ;;  %p882_p1 = scmp.eq.s32.totalorder %s699_s16, 0 }
   0x8   : > { %p112_p3 = scmp.eq.s32.totalorder %s434_s17, 1  ;;  %p435_p5 = scmp.ge.s32.totalorder %s650_s15, 1 }
   0x9   : > { %p708_p4 = por %p882_p1, %p40_p0  ;;  %p119_p7 = scmp.lt.s32.totalorder %s650_s15, 3 }
   0xa   : > { %p713_p6 = por %p112_p3, %p40_p0  ;;  %s652_s21 = smov [#allocation5]  }
   0xb   : > { %s885_s18 = scalar_select %p708_p4, 1, 0 }
   0xc   : > { %s886_s19 = scalar_select %p713_p6, 1, 0 }
   0xd   : > { %p718_p8 = pnand %p435_p5, %p119_p7  ;;  %s131_s22 = sshll.u32 %s652_s21, 4  ;;  %s722_s22 = int_to_ptr.vmem [resolvable:$true] %s131_s22 }
   0xe   : > { %s734_s24 = sadd.s32 1, %s650_s15   ;;  %s27_s25 = sadd.s32 1, %s646_s14 }
   0xf   : > { %s887_s20 = scalar_select %p718_p8, 1, 0 }
  0x10   : > { %p464_p9 = pneg %p718_p8  ;;  %s24_s26 = ssub.s32 %s650_s15, %s734_s24 }
  0x11   : > { %s522_s29 = scalar_lea.hbm %s879_s1, 512 }
  0x12   : > { %p729_p11 = pnand %p464_p9, %p882_p1  ;;  %p523_p12 = scmp.ne.s32.totalorder %s879_s1, %s522_s29 }
  0x13   : > { %p529_p5 = scmp.lt.u32.totalorder %s522_s29, %s879_s1 }
  0x14   : > { %p524_p13 = pneg %p729_p11 }
  0x16   : > { %p525_p0 = pnand %p524_p13, %p523_p12 }
  0x18   : > { %p526_p3 = pneg %p525_p0 }
  0x1a   : > { %p531_p7 = pnand %p529_p5, %p526_p3 }
  0x1c   : > { %534 = shalt.err (!%p531_p7)
}
  0x1d   : > { %s535_s7 = scalar_lea.vmem %s722_s22, 512  ;;  %p543_p2 = scmp.lt.s32.totalorder %s722_s22, %s722_s22 }
  0x1e   : > { %p536_p9 = scmp.ne.s32.totalorder %s722_s22, %s535_s7  ;;  %p544_p6 = scmp.lt.s32.totalorder %s535_s7, %s535_s7 }
  0x20   : > { %p538_p10 = pnand %p536_p9, %p524_p13  ;;  %p545_p4 = por %p544_p6, %p543_p2 }
  0x22   : > { %p539_p1 = pneg %p538_p10 }
  0x24   : > { %p546_p8 = pnand %p545_p4, %p539_p1 }
  0x26   : > { %549 = shalt.err (!%p546_p8)
}
  0x27   : > { %s653_s8 = smov 256   ;;  %s654_s9 = smov 16  }
  0x28   : > { %467 = dma.hbm_to_vmem [thread:$0]  (!%p729_p11), %s879_s1, 512, %s722_s22, [#allocation6], %s653_s8, %s653_s8, %s654_s9  }
  0x29   : > { %p25_p2 = scmp.eq.s32.totalorder %s24_s26, 0  ;;  %p34_p1 = scmp.ne.s32.totalorder %s646_s14, %s642_s13 }
  0x2a   : > { %p35_p4 = scmp.eq.s32.totalorder %s650_s15, 0  ;;  %p477_p6 = scmp.lt.s32.totalorder %s650_s15, 2 }
  0x2b   : > { %s765_s17 = scalar_select %p25_p2, %s646_s14, %s27_s25  }
  0x2c   : > { %p36_p8 = por %p35_p4, %p34_p1  ;;  %p889_p10 = scmp.eq.s32.totalorder %s699_s16, 1 }
  0x2d   : > { %s148_s27 = sand.u32 1, %s646_s14   ;;  %s439_s28 = sshll.u32 %s650_s15, 6 }
  0x2e   : > { %p769_p12 = por %p889_p10, %p34_p1  ;;  %s438_s29 = sshll.u32 %s148_s27, 2 }
  0x2f   : > { %s778_s4 = scalar_lea.hbm %s878_s0, %s439_s28  ;;  %s152_s22 = scalar_lea.vmem [#allocation2], %s438_s29 }
  0x30   : > { %s159_s25 = sshll.u32 %s152_s22, 4  ;;  %p780_p11 = pnand %p477_p6, %p36_p8  ;;  %s784_s25 = int_to_ptr.vmem [resolvable:$true] %s159_s25 }
  0x31   : > { %s149_s5 = scalar_lea.sflag [#allocation3], %s148_s27  ;;  %s550_s6 = scalar_lea.hbm %s778_s4, 64 }
  0x32   : > { %p551_p13 = scmp.ne.s32.totalorder %s778_s4, %s550_s6  ;;  %p552_p0 = pneg %p780_p11 }
  0x33   : > { %s555_s9 = scalar_lea.hbm %s878_s0, 128  ;;  %p556_p7 = scmp.lt.u32.totalorder %s778_s4, %s878_s0 }
  0x34   : > { %p553_p3 = pnand %p552_p0, %p551_p13  ;;  %p557_p9 = scmp.lt.u32.totalorder %s555_s9, %s550_s6 }
  0x35   : > { %p559_p1 = scmp.lt.u32.totalorder %s550_s6, %s778_s4 }
  0x36   : > { %p554_p5 = pneg %p553_p3  ;;  %p558_p2 = por %p557_p9, %p556_p7 }
  0x38   : > { %p560_p4 = por %p559_p1, %p558_p2 }
  0x3a   : > { %p561_p6 = pnand %p560_p4, %p554_p5 }
  0x3c   : > { %564 = shalt.err (!%p561_p6)
}
  0x3d   : > { %s565_s27 = scalar_lea.vmem %s784_s25, 64  ;;  %s655_s28 = smov [#allocation2]  }
  0x3e   : > { %p566_p8 = scmp.ne.s32.totalorder %s784_s25, %s565_s27  ;;  %s570_s29 = sshll.u32 %s655_s28, 4  ;;  %s571_s29 = int_to_ptr.vmem [resolvable:$false] %s570_s29 }
  0x3f   : > { %s572_s23 = scalar_lea.vmem %s571_s29, 128  ;;  %p573_p3 = scmp.lt.s32.totalorder %s784_s25, %s571_s29 }
  0x40   : > { %p568_p10 = pnand %p566_p8, %p552_p0  ;;  %p574_p7 = scmp.lt.s32.totalorder %s572_s23, %s565_s27 }
  0x42   : > { %p569_p13 = pneg %p568_p10  ;;  %p575_p9 = por %p574_p7, %p573_p3 }
  0x44   : > { %p576_p2 = pnand %p575_p9, %p569_p13 }
  0x46   : > { %579 = shalt.err (!%p576_p2)
}
  0x47   : > { %471 = dma.hbm_to_vmem [thread:$0]  (!%p780_p11), %s778_s4, 64, %s784_s25, %s149_s5  }
  0x48   : > { %p892_p5 = scmp.ne.s32.totalorder %s887_s20, 0 }
  0x49   : > { %s814_s30 = sand.u32 (!%p892_p5), 1, %s642_s13   ;;  %p893_p0 = scmp.ne.s32.totalorder (!%p892_p5), %s885_s18, 0 }
  0x4a   : > { %168 = sbr.rel (%p892_p5) target bundleno = 320 (0x140), region = 32  ;;  %s441_s22 = sshll.u32 (!%p892_p5), %s814_s30, 2 }
  0x4b   : > { %s171_s6 = scalar_lea.sflag (!%p892_p5), [#allocation3], %s814_s30  ;;  %s174_s7 = scalar_lea.vmem (!%p892_p5), [#allocation2], %s441_s22 }
  0x51   : > { %625 = dma.done.wait (%p893_p0), %s171_s6, 64  }
  0x52   : > { %627 = vsyncadd (%p893_p0), %s171_s6, 4294967232  ;;  %p894_p1 = scmp.eq.s32.totalorder %s699_s16, 0 }
  0x54   : > { %629 = dma.done.wait (%p894_p1), [#allocation6], 512   ;;  %p895_p11 = pmov %p894_p1 }
  0x55   : > { %v656_v0 = vmov 0   ;;  %v516_v1 = vld [vmem:[#allocation5 + $0x4] ss:$16 sps:$4 sm:$0xff]   ;;  %v518_v2 = vld [vmem:[#allocation5 + $0xc] ss:$16 sps:$4 sm:$0xff]   ;;  %vm249_vm0 = vcmask 130048   ;;  %v209_v6 = vlaneseq }
  0x56   : > { %631 = vsyncadd (%p895_p11), [#allocation6], 4294966784  ;;  %285 = vmatprep.mubr.bf16.mxu0 %v656_v0  ;;  %326 = vmatprep.mubr.bf16.mxu1 %v656_v0  ;;  %v520_v3 = vld [vmem:[#allocation5] ss:$16 sps:$4 sm:$0xff]   ;;  %v521_v4 = vld [vmem:[#allocation5 + $0x8] ss:$16 sps:$4 sm:$0xff]  }
  0x57   : > { %253 = vmatprep.subr.bf16.mxu0 %v516_v1  ;;  %294 = vmatprep.subr.bf16.mxu1 %v518_v2  ;;  %v202_v5 = vld [vmem:[%s174_s7] sm:$0xf]  ;;  %v210_v7 = vshrl.u32 %v209_v6, 7  ;;  %s443_s18 = sshll.u32 %s814_s30, 5  ;;  %s455_s25 = sshll.u32 %s699_s16, 9 }
  0x58   : > { %254 = vmatpush1.bf16.msra.mxu0 %v520_v3  ;;  %295 = vmatpush1.bf16.msra.mxu1 %v521_v4  ;;  %v207_v10 = vld [vmem:[%s880_s2] sm:$0xf]  ;;  %s200_s26 = scalar_lea.vmem [#allocation7], %s443_s18  ;;  %s834_s10 = scalar_lea.hbm %s881_s3, %s455_s25 }
  0x59   : > { %v211_v8 = vsub.s32 0, %v210_v7  ;;  %v219_v9 = vsub.s32 2, %v210_v7  ;;  %v215_v11 = vsub.s32 1, %v210_v7  ;;  %v223_v12 = vsub.s32 3, %v210_v7  ;;  %s354_s5 = sshll.u32 %s200_s26, 4  ;;  %s340_s16 = scalar_lea.sflag [#allocation4], %s814_s30  ;;  %s836_s5 = int_to_ptr.vmem [resolvable:$true] %s354_s5 }
  0x5a   : > { %s580_s11 = scalar_lea.vmem %s836_s5, 512  ;;  %s657_s27 = smov [#allocation7]  }
  0x5b   : > { %448 = vmatmul.mubr.msk.bf16.vlgmr.msra.gmra.mrb[0].mxu0 %vm249_vm0, %v202_v5  ;;  %449 = vmatmul.mubr.msk.bf16.vlgmr.msra.gmra.mrb[0].mxu1 %vm249_vm0, %v202_v5  ;;  %v212_v13 = vrot.slane %v207_v10, %v211_v8  ;;  %v220_v14 = vrot.slane %v207_v10, %v219_v9  ;;  %v216_v15 = vrot.slane %v207_v10, %v215_v11  ;;  %p581_p4 = scmp.ne.s32.totalorder %s836_s5, %s580_s11  ;;  %s584_s28 = sshll.u32 %s657_s27, 4  ;;  %s585_s28 = int_to_ptr.vmem [resolvable:$false] %s584_s28 }
  0x5c   : > { %v224_v16 = vrot.slane %v207_v10, %v223_v12  ;;  %s586_s29 = scalar_lea.vmem %s585_s28, 1024  ;;  %p587_p10 = scmp.lt.s32.totalorder %s836_s5, %s585_s28 }
  0x5d   : > { %p582_p6 = pnand %p581_p4, %p769_p12  ;;  %p588_p13 = scmp.lt.s32.totalorder %s586_s29, %s580_s11 }
  0x5f   : > { %p583_p8 = pneg %p582_p6  ;;  %p589_p3 = por %p588_p13, %p587_p10 }
  0x61   : > { %p590_p7 = pnand %p589_p3, %p583_p8 }
 0x12e   : > { %v287_v17 = vpop.f32.mrb[0].mxu0  ;;  %v328_v18 = vpop.f32.mrb[0].mxu1 }
 0x12f   : > { %v288_v19 = vadd.f32 %v287_v17, %v212_v13  ;;  %v329_v20 = vadd.f32 %v328_v18, %v220_v14  ;;  %v289_v21 = vpop.f32.mrb[1].mxu0  ;;  %v330_v22 = vpop.f32.mrb[1].mxu1 }
 0x130   : > { %v290_v23 = vadd.f32 %v289_v21, %v216_v15  ;;  %v331_v24 = vadd.f32 %v330_v22, %v224_v16  ;;  %v291_v25 = vpop.f32.mrb[2].mxu0  ;;  %v332_v26 = vpop.f32.mrb[2].mxu1 }
 0x131   : > { %335 = vst [vmem:[%s200_s26] sm:$0xff] %v288_v19  ;;  %337 = vst [vmem:[%s200_s26 + $0x10] sm:$0xff] %v329_v20  ;;  %v292_v27 = vpop.f32.mrb[3].mxu0  ;;  %v333_v28 = vpop.f32.mrb[3].mxu1 }
 0x132   : > { %336 = vst [vmem:[%s200_s26 + $0x8] sm:$0xff] %v290_v23  ;;  %338 = vst [vmem:[%s200_s26 + $0x18] sm:$0xff] %v331_v24 }
 0x133   : > { %593 = shalt.err (!%p590_p7)
}
 0x134   : > { %s594_s23 = scalar_lea.hbm %s834_s10, 512  ;;  %s598_s6 = scalar_lea.hbm %s881_s3, 1024 }
 0x135   : > { %p595_p9 = scmp.ne.s32.totalorder %s834_s10, %s594_s23  ;;  %p599_p0 = scmp.lt.u32.totalorder %s834_s10, %s881_s3 }
 0x136   : > { %p600_p1 = scmp.lt.u32.totalorder %s598_s6, %s594_s23  ;;  %p602_p4 = scmp.lt.u32.totalorder %s594_s23, %s834_s10 }
 0x137   : > { %p596_p2 = pnand %p595_p9, %p769_p12 }
 0x138   : > { %p601_p11 = por %p600_p1, %p599_p0 }
 0x139   : > { %p597_p5 = pneg %p596_p2 }
 0x13a   : > { %p603_p6 = por %p602_p4, %p601_p11 }
 0x13c   : > { %p604_p8 = pnand %p603_p6, %p597_p5 }
 0x13e   : > { %607 = shalt.err (!%p604_p8)
}
 0x13f   : > { %462 = dma.vmem_to_hbm [thread:$0]  (%p769_p12), %s836_s5, 512, %s834_s10, %s340_s16  }
 0x140 PF: > { %s366_s20 = sand.u32 1, %s638_s12   ;;  %p896_p10 = scmp.ne.s32.totalorder %s886_s19, 0 }
 0x141   : > { %p897_p13 = scmp.ge.s32.totalorder %s650_s15, 2  ;;  %s367_s4 = scalar_lea.sflag [#allocation4], %s366_s20 }
 0x143   : > { %p473_p3 = pnand %p897_p13, %p896_p10 }
 0x145   : > { %633 = dma.done.wait (!%p473_p3), %s367_s4, 512  }
 0x146   : > { %635 = vsyncadd (!%p473_p3), %s367_s4, 4294966784  ;;  %p17_p7 = scmp.ge.s32.totalorder %s734_s24, 4   ;;  %s898_s12 = smov %s642_s13 }
 0x147   : > { %s899_s13 = smov %s646_s14  ;;  %s900_s14 = smov %s765_s17 }
 0x148   : > { %s901_s15 = smov %s734_s24  ;;  %19 = sbr.rel (!%p17_p7) target bundleno = 6 (0x6), region = 81 }
 0x14f   :  { %372 = vsyncpa [#allocation3], 1 }
 0x150   :  { %374 = vsyncpa [#allocation3 + $0x1], 1 }
 0x151   :  { %375 = vsyncpa [#allocation6], 1 }
 0x152   :  { %376 = vsyncpa [#allocation4], 1 }
 0x153   :  { %378 = vsyncpa [#allocation4 + $0x1], 1 }

</bundles_post_ra>
